<compile_context>
chip_gen: v7x
topology: tpu7x:2x2x1
jax: 0.10.0
libtpu: 0.0.40
codegen_flags: <defaults>
</compile_context>

<pallas_src>
import functools
import math

import jax
import jax.numpy as jnp
from jax import lax
from jax.experimental import pallas as pl
from jax.experimental.pallas import tpu as pltpu

_MASK_VALUE = -10000.0               # matches the PyTorch module's masking constant
_VMEM_LIMIT = 40 * 1024 * 1024       # <= ~40 MiB leaves headroom on v7x's 64 MiB VMEM


def _block(dim: int, preferred: int, align: int) -> int:
    """Largest tile <= `preferred` that divides `dim` and is a multiple of `align`
    (keeps the last-two-dims (8,128) layout legality); falls back to the full dim.

    # TODO(synk): dims with no aligned divisor <= preferred fall back to the full
    # dimension; pad such shapes upstream to stay under v7x's 64 MiB VMEM.
    """
    if dim <= preferred:
        return dim
    t = (preferred // align) * align
    while t >= align:
        if dim % t == 0:
            return t
        t -= align
    return dim


# ---------------------------------------------------------------------------
# Tiled linear:  out = x @ W + b   with f32 accumulation.
# Grid (M/tm, N/tn, K/tk); K is the innermost "arbitrary" (reduction) axis.
# ---------------------------------------------------------------------------
def _linear_kernel(x_ref, w_ref, b_ref, o_ref, acc_ref, *, compute_dtype):
    @pl.when(pl.program_id(2) == 0)
    def _():
        acc_ref[...] = jnp.zeros(acc_ref.shape, acc_ref.dtype)

    acc_ref[...] += jnp.dot(x_ref[...].astype(compute_dtype), w_ref[...],
                            preferred_element_type=jnp.float32)

    @pl.when(pl.program_id(2) == pl.num_programs(2) - 1)
    def _():
        o_ref[...] = (acc_ref[...] + b_ref[...].astype(jnp.float32)).astype(o_ref.dtype)


def _linear(x2d, w, b, *, out_dtype, compute_dtype,
            tm_pref=512, tk_pref=1024, tn_pref=512):
    M, K = x2d.shape
    Kw, N = w.shape
    assert K == Kw
    b = b.reshape(1, N)
    tm = _block(M, tm_pref, 8)     # second-minor dim of x / out tiles
    tk = _block(K, tk_pref, 128)   # lane dim of x tile, second-minor of w tile
    tn = _block(N, tn_pref, 128)   # lane dim of w / out tiles
    kernel = functools.partial(_linear_kernel, compute_dtype=compute_dtype)
    return pl.pallas_call(
        kernel,
        out_shape=jax.ShapeDtypeStruct((M, N), out_dtype),
        grid_spec=pltpu.PrefetchScalarGridSpec(
            num_scalar_prefetch=0,
            grid=(M // tm, N // tn, K // tk),
            in_specs=[
                pl.BlockSpec((tm, tk), lambda i, j, k: (i, k)),   # x tile (cast in-kernel)
                pl.BlockSpec((tk, tn), lambda i, j, k: (k, j)),   # W tile (pre-cast)
                pl.BlockSpec((1, tn), lambda i, j, k: (0, j)),    # bias (f32)
            ],
            out_specs=pl.BlockSpec((tm, tn), lambda i, j, k: (i, j)),
            scratch_shapes=[pltpu.VMEM((tm, tn), jnp.float32)],
        ),
        compiler_params=pltpu.CompilerParams(
            dimension_semantics=("parallel", "parallel", "arbitrary"),
            vmem_limit_bytes=_VMEM_LIMIT,
        ),
    )(x2d, w, b)


# ---------------------------------------------------------------------------
# Flash attention: grid (batch, head, q_block, kv_block); kv is the innermost
# "arbitrary" axis with m/l/acc scratch accumulated across it.
#
# q/k/v all come from ONE packed array of shape (3*B*NH, S, D) laid out as
# (part, batch, head, seq, dim); the index maps pick the part and head, and
# clamp the kv block index with min(ki, qi) so above-diagonal blocks are never
# DMA'd (their compute is skipped as well).
# ---------------------------------------------------------------------------
def _flash_kernel(q_ref, k_ref, v_ref, o_ref, m_ref, l_ref, acc_ref, *,
                  scale, approx_recip):
    tq = q_ref.shape[1]
    tkv = k_ref.shape[1]
    qi = pl.program_id(2)
    ki = pl.program_id(3)

    @pl.when(ki == 0)
    def _():
        m_ref[...] = jnp.full(m_ref.shape, -jnp.inf, m_ref.dtype)
        l_ref[...] = jnp.zeros(l_ref.shape, l_ref.dtype)
        acc_ref[...] = jnp.zeros(acc_ref.shape, acc_ref.dtype)

    def step(apply_mask):
        # Fold the softmax scale into q: tq*D multiplies instead of tq*tkv.
        q = q_ref[0] * scale     # (tq, D)  compute dtype
        k = k_ref[0]             # (tkv, D)
        v = v_ref[0]             # (tkv, D)

        # q @ k^T without an explicit transpose: contract last dims on the MXU.
        s = lax.dot_general(q, k, (((1,), (1,)), ((), ())),
                            preferred_element_type=jnp.float32)

        if apply_mask:
            # Only the diagonal block intersects the causal boundary.
            row = qi * tq + lax.broadcasted_iota(jnp.int32, (tq, tkv), 0)
            col = ki * tkv + lax.broadcasted_iota(jnp.int32, (tq, tkv), 1)
            s = jnp.where(row >= col, s, _MASK_VALUE)

        m_prev = m_ref[...]                                           # (tq, 1)
        m_new = jnp.maximum(m_prev, jnp.max(s, axis=-1, keepdims=True))
        alpha = jnp.exp(m_prev - m_new)                               # (tq, 1)
        p = jnp.exp(s - m_new)                                        # (tq, tkv) f32
        l_ref[...] = alpha * l_ref[...] + jnp.sum(p, axis=-1, keepdims=True)
        acc_ref[...] = alpha * acc_ref[...] + jnp.dot(
            p.astype(v.dtype), v, preferred_element_type=jnp.float32)
        m_ref[...] = m_new

    # Strictly-below-diagonal blocks need no mask; the diagonal block does;
    # above-diagonal blocks contribute nothing (and their K/V DMA is clamped
    # away by the min(ki, qi) index maps).
    @pl.when(ki < qi)
    def _():
        step(apply_mask=False)

    @pl.when(ki == qi)
    def _():
        step(apply_mask=True)

    @pl.when(ki == pl.num_programs(3) - 1)
    def _():
        denom = l_ref[...]
        inv = pl.reciprocal(denom, approx=True) if approx_recip else 1.0 / denom
        o_ref[0] = (acc_ref[...] * inv).astype(o_ref.dtype)


def _flash_attention(qkv_t, *, batch, num_heads, scale, out_dtype, approx_recip,
                     block_seq=512):
    three_bnh, S, D = qkv_t.shape
    B, NH = batch, num_heads
    assert three_bnh == 3 * B * NH
    # Equal, diagonal-aligned q/kv blocks are required both by the DMA clamp and
    # by the block-local -10000 masking (every row of the diagonal block keeps at
    # least its own column unmasked, so the block max never collapses to -10000).
    tq = _block(S, block_seq, 8)
    tkv = tq

    kernel = functools.partial(_flash_kernel, scale=scale, approx_recip=approx_recip)

    def q_map(b, h, qi, ki):
        return (b * NH + h, qi, 0)

    def k_map(b, h, qi, ki):
        return (B * NH + b * NH + h, jnp.minimum(ki, qi), 0)

    def v_map(b, h, qi, ki):
        return (2 * B * NH + b * NH + h, jnp.minimum(ki, qi), 0)

    return pl.pallas_call(
        kernel,
        out_shape=jax.ShapeDtypeStruct((B * NH, S, D), out_dtype),
        grid_spec=pltpu.PrefetchScalarGridSpec(
            num_scalar_prefetch=0,
            grid=(B, NH, S // tq, S // tkv),
            in_specs=[
                pl.BlockSpec((1, tq, D), q_map),
                pl.BlockSpec((1, tkv, D), k_map),
                pl.BlockSpec((1, tkv, D), v_map),
            ],
            out_specs=pl.BlockSpec((1, tq, D),
                                   lambda b, h, qi, ki: (b * NH + h, qi, 0)),
            scratch_shapes=[
                pltpu.VMEM((tq, 1), jnp.float32),   # running row max m
                pltpu.VMEM((tq, 1), jnp.float32),   # running row sum l
                pltpu.VMEM((tq, D), jnp.float32),   # output accumulator
            ],
        ),
        compiler_params=pltpu.CompilerParams(
            dimension_semantics=("parallel", "parallel", "parallel", "arbitrary"),
            vmem_limit_bytes=_VMEM_LIMIT,
        ),
    )(qkv_t, qkv_t, qkv_t)


# ---------------------------------------------------------------------------
# Full forward (eval mode, no cache).
# ---------------------------------------------------------------------------
@functools.partial(jax.jit,
                   static_argnames=("num_heads", "head_size", "compute_dtype",
                                    "block_seq"))
def unidirectional_attention(x, wqkv, bqkv, wo, bo, *, num_heads, head_size,
                             compute_dtype=jnp.bfloat16, block_seq=512):
    """x: (B, S, H).  Weights pre-transposed: wqkv (H, 3*nhd), wo (nhd, H).
    Weights may already be in compute_dtype (preferred: cast at prep time)."""
    B, S, H = x.shape
    nhd = num_heads * head_size
    scale = 1.0 / math.sqrt(head_size)
    approx_recip = (jnp.dtype(compute_dtype) != jnp.dtype(jnp.float32))

    wqkv_c = wqkv if wqkv.dtype == jnp.dtype(compute_dtype) else wqkv.astype(compute_dtype)
    wo_c = wo if wo.dtype == jnp.dtype(compute_dtype) else wo.astype(compute_dtype)

    # 1) fused QKV projection (lane-dense (B*S, 3*nhd) output, f32 accumulation)
    qkv = _linear(x.reshape(B * S, H), wqkv_c, bqkv,
                  out_dtype=compute_dtype, compute_dtype=compute_dtype)

    # One layout transpose to (3, B, NH, S, D), flattened to (3*B*NH, S, D).
    # The flash kernel picks q/k/v and the head via index maps on this single
    # array — no per-part slices and no lane-misaligned in-kernel slicing.
    qkv_t = (qkv.reshape(B, S, 3, num_heads, head_size)
                 .transpose(2, 0, 3, 1, 4)
                 .reshape(3 * B * num_heads, S, head_size))

    # 2) flash attention with (batch, head, q_block) on parallel grid axes
    attn = _flash_attention(qkv_t, batch=B, num_heads=num_heads, scale=scale,
                            out_dtype=compute_dtype, approx_recip=approx_recip,
                            block_seq=block_seq)                  # (B*NH, S, D)

    # 3) output projection (lane-dense (B*S, H) output)
    combined = (attn.reshape(B, num_heads, S, head_size)
                    .transpose(0, 2, 1, 3)
                    .reshape(B * S, nhd))
    out = _linear(combined, wo_c, bo, out_dtype=x.dtype, compute_dtype=compute_dtype)
    return out.reshape(B, S, H)


# ---------------------------------------------------------------------------
# Pure-JAX reference mirroring the PyTorch forward (eval mode, no cache).
# `compute_dtype` rounds the matmul operands the same way the kernel does.
# ---------------------------------------------------------------------------
def _reference(x, wqkv, bqkv, wo, bo, *, num_heads, head_size,
               compute_dtype=jnp.float32):
    B, S, H = x.shape
    nhd = num_heads * head_size
    cd = compute_dtype
    scale = 1.0 / math.sqrt(head_size)

    qkv = jnp.dot(x.astype(cd), wqkv.astype(cd),
                  preferred_element_type=jnp.float32) + bqkv          # (B,S,3nhd) f32
    qkv = qkv.reshape(B, S, 3, num_heads, head_size).astype(cd)
    q = qkv[:, :, 0].transpose(0, 2, 1, 3)                            # (B,NH,S,D)
    k = qkv[:, :, 1].transpose(0, 2, 1, 3)
    v = qkv[:, :, 2].transpose(0, 2, 1, 3)

    scores = jnp.einsum("bhqd,bhkd->bhqk", q, k,
                        preferred_element_type=jnp.float32) * scale
    mask = jnp.arange(S)[:, None] >= jnp.arange(S)[None, :]
    scores = jnp.where(mask, scores, jnp.float32(_MASK_VALUE))
    m = jnp.max(scores, axis=-1, keepdims=True)
    p = jnp.exp(scores - m)
    l = jnp.sum(p, axis=-1, keepdims=True)
    comb = jnp.einsum("bhqk,bhkd->bhqd", p.astype(cd), v,
                      preferred_element_type=jnp.float32) / l
    comb = comb.transpose(0, 2, 1, 3).reshape(B, S, nhd).astype(cd)
    out = jnp.dot(comb, wo.astype(cd), preferred_element_type=jnp.float32) + bo
    return out.astype(x.dtype)


if __name__ == "__main__":
    B, S = 2, 8
    hidden_size = 32
    num_heads = 4
    head_size = hidden_size // num_heads   # 8
    nhd = num_heads * head_size

    key = jax.random.PRNGKey(0)
    k_x, k_wqkv, k_bqkv, k_wo, k_bo = jax.random.split(key, 5)

    lim_qkv = 1.0 / math.sqrt(hidden_size)
    lim_out = 1.0 / math.sqrt(nhd)
    x = jax.random.normal(k_x, (B, S, hidden_size), dtype=jnp.float32)
    wqkv = jax.random.uniform(k_wqkv, (hidden_size, 3 * nhd),
                              minval=-lim_qkv, maxval=lim_qkv, dtype=jnp.float32)
    bqkv = jax.random.uniform(k_bqkv, (1, 3 * nhd),
                              minval=-lim_qkv, maxval=lim_qkv, dtype=jnp.float32)
    wo = jax.random.uniform(k_wo, (nhd, hidden_size),
                            minval=-lim_out, maxval=lim_out, dtype=jnp.float32)
    bo = jax.random.uniform(k_bo, (1, hidden_size),
                            minval=-lim_out, maxval=lim_out, dtype=jnp.float32)

    # Strict check: full-f32 compute path vs f32 reference.
    out_f32 = unidirectional_attention(x, wqkv, bqkv, wo, bo,
                                       num_heads=num_heads, head_size=head_size,
                                       compute_dtype=jnp.float32)
    out_f32 = jax.block_until_ready(out_f32)
    ref_f32 = _reference(x, wqkv, bqkv, wo, bo,
                         num_heads=num_heads, head_size=head_size,
                         compute_dtype=jnp.float32)
    assert out_f32.shape == (B, S, hidden_size)
    assert jnp.allclose(out_f32, ref_f32, atol=1e-4, rtol=1e-4), "f32 mismatch"

    # Production config: bf16 MXU operands (weights pre-cast at prep time),
    # f32 accumulation / softmax.
    wqkv_bf16 = wqkv.astype(jnp.bfloat16)
    wo_bf16 = wo.astype(jnp.bfloat16)
    out_bf16 = unidirectional_attention(x, wqkv_bf16, bqkv, wo_bf16, bo,
                                        num_heads=num_heads, head_size=head_size,
                                        compute_dtype=jnp.bfloat16)
    out_bf16 = jax.block_until_ready(out_bf16)
    ref_bf16 = _reference(x, wqkv, bqkv, wo, bo,
                          num_heads=num_heads, head_size=head_size,
                          compute_dtype=jnp.bfloat16)
    assert jnp.allclose(out_bf16, ref_bf16, atol=2e-2, rtol=2e-2), "bf16 mismatch"

    print("KERNEL_OK")
</pallas_src>

<mosaic_0001>
module attributes {stable_mosaic.version = 11 : i64} {
  func.func @_linear_kernel(%arg0: i32, %arg1: i32, %arg2: i32, %arg3: memref<16x32xf32, #tpu.memory_space<vmem>>, %arg4: memref<32x96xf32, #tpu.memory_space<vmem>>, %arg5: memref<1x96xf32, #tpu.memory_space<vmem>>, %arg6: memref<16x96xf32, #tpu.memory_space<vmem>>, %arg7: memref<16x96xf32, #tpu.memory_space<vmem>>) attributes {dimension_semantics = [#tpu.dimension_semantics<parallel>, #tpu.dimension_semantics<parallel>, #tpu.dimension_semantics<arbitrary>], iteration_bounds = array<i64: 1, 1, 1>, scalar_prefetch = 0 : i64, scratch_operands = 1 : i64, tpu.core_type = #tpu.core_type<tc>, window_params = [{transform_indices = @transform_0, window_bounds = array<i64: 16, 32>}, {transform_indices = @transform_1, window_bounds = array<i64: 32, 96>}, {transform_indices = @transform_2, window_bounds = array<i64: 1, 96>}, {transform_indices = @transform_3, window_bounds = array<i64: 16, 96>}]} {
    %c0_i32 = arith.constant 0 : i32
    %0 = arith.cmpi eq, %arg2, %c0_i32 : i32
    %1 = arith.extui %0 : i1 to i32
    %c0_i32_0 = arith.constant 0 : i32
    %2 = arith.cmpi ne, %1, %c0_i32_0 : i32
    scf.if %2 {
      %cst_10 = arith.constant 0.000000e+00 : f32
      %12 = vector.broadcast %cst_10 : f32 to vector<16x96xf32>
      %c0_11 = arith.constant 0 : index
      %c0_12 = arith.constant 0 : index
      %13 = vector.load %arg7[%c0_11, %c0_12] : memref<16x96xf32, #tpu.memory_space<vmem>>, vector<16x96xf32>
      tpu.vector_store %arg7[%c0_11, %c0_12], %12 {strides = array<i32>} : memref<16x96xf32, #tpu.memory_space<vmem>>, vector<16x96xf32>,
    } else {
    }
    %c0 = arith.constant 0 : index
    %c0_1 = arith.constant 0 : index
    %3 = vector.load %arg7[%c0, %c0_1] : memref<16x96xf32, #tpu.memory_space<vmem>>, vector<16x96xf32>
    %c0_2 = arith.constant 0 : index
    %c0_3 = arith.constant 0 : index
    %4 = vector.load %arg3[%c0_2, %c0_3] : memref<16x32xf32, #tpu.memory_space<vmem>>, vector<16x32xf32>
    %c0_4 = arith.constant 0 : index
    %c0_5 = arith.constant 0 : index
    %5 = vector.load %arg4[%c0_4, %c0_5] : memref<32x96xf32, #tpu.memory_space<vmem>>, vector<32x96xf32>
    %cst = arith.constant dense<0.000000e+00> : vector<16x96xf32>
    %6 = tpu.matmul %4, %5, %cst {dimension_numbers = #tpu.dot_dimension_numbers<[1], [0], [0], [1], [0, 0, 1, 1], [], []>} : vector<16x32xf32>, vector<32x96xf32>, vector<16x96xf32> -> vector<16x96xf32>
    %7 = arith.addf %3, %6 : vector<16x96xf32>
    %c0_6 = arith.constant 0 : index
    %c0_7 = arith.constant 0 : index
    %8 = vector.load %arg7[%c0_6, %c0_7] : memref<16x96xf32, #tpu.memory_space<vmem>>, vector<16x96xf32>
    tpu.vector_store %arg7[%c0_6, %c0_7], %7 {strides = array<i32>} : memref<16x96xf32, #tpu.memory_space<vmem>>, vector<16x96xf32>,
    %c0_i32_8 = arith.constant 0 : i32
    %9 = arith.cmpi eq, %arg2, %c0_i32_8 : i32
    %10 = arith.extui %9 : i1 to i32
    %c0_i32_9 = arith.constant 0 : i32
    %11 = arith.cmpi ne, %10, %c0_i32_9 : i32
    scf.if %11 {
      %c0_10 = arith.constant 0 : index
      %c0_11 = arith.constant 0 : index
      %12 = vector.load %arg7[%c0_10, %c0_11] : memref<16x96xf32, #tpu.memory_space<vmem>>, vector<16x96xf32>
      %c0_12 = arith.constant 0 : index
      %c0_13 = arith.constant 0 : index
      %13 = vector.load %arg5[%c0_12, %c0_13] : memref<1x96xf32, #tpu.memory_space<vmem>>, vector<1x96xf32>
      %14 = vector.broadcast %13 : vector<1x96xf32> to vector<16x96xf32>
      %15 = arith.addf %12, %14 : vector<16x96xf32>
      %c0_14 = arith.constant 0 : index
      %c0_15 = arith.constant 0 : index
      %16 = vector.load %arg6[%c0_14, %c0_15] : memref<16x96xf32, #tpu.memory_space<vmem>>, vector<16x96xf32>
      tpu.vector_store %arg6[%c0_14, %c0_15], %15 {strides = array<i32>} : memref<16x96xf32, #tpu.memory_space<vmem>>, vector<16x96xf32>,
    } else {
    }
    return
  }
  func.func @transform_0(%arg0: i32, %arg1: i32, %arg2: i32) -> (i32, i32) {
    %c0_i32 = arith.constant 0 : i32
    return %arg0, %arg2 : i32, i32
  }
  func.func @transform_1(%arg0: i32, %arg1: i32, %arg2: i32) -> (i32, i32) {
    %c0_i32 = arith.constant 0 : i32
    return %arg2, %arg1 : i32, i32
  }
  func.func @transform_2(%arg0: i32, %arg1: i32, %arg2: i32) -> (i32, i32) {
    %c0_i32 = arith.constant 0 : i32
    %c0_i32_0 = arith.constant 0 : i32
    return %c0_i32, %arg1 : i32, i32
  }
  func.func @transform_3(%arg0: i32, %arg1: i32, %arg2: i32) -> (i32, i32) {
    %c0_i32 = arith.constant 0 : i32
    return %arg0, %arg1 : i32, i32
  }
}

module attributes {stable_mosaic.version = 11 : i64} {
  func.func @_flash_kernel(%arg0: i32, %arg1: i32, %arg2: i32, %arg3: i32, %arg4: memref<1x8x8xf32, #tpu.memory_space<vmem>>, %arg5: memref<1x8x8xf32, #tpu.memory_space<vmem>>, %arg6: memref<1x8x8xf32, #tpu.memory_space<vmem>>, %arg7: memref<1x8x8xf32, #tpu.memory_space<vmem>>, %arg8: memref<8x1xf32, #tpu.memory_space<vmem>>, %arg9: memref<8x1xf32, #tpu.memory_space<vmem>>, %arg10: memref<8x8xf32, #tpu.memory_space<vmem>>) attributes {dimension_semantics = [#tpu.dimension_semantics<parallel>, #tpu.dimension_semantics<parallel>, #tpu.dimension_semantics<parallel>, #tpu.dimension_semantics<arbitrary>], iteration_bounds = array<i64: 2, 4, 1, 1>, scalar_prefetch = 0 : i64, scratch_operands = 3 : i64, tpu.core_type = #tpu.core_type<tc>, window_params = [{transform_indices = @transform_0, window_bounds = array<i64: 1, 8, 8>}, {transform_indices = @transform_1, window_bounds = array<i64: 1, 8, 8>}, {transform_indices = @transform_2, window_bounds = array<i64: 1, 8, 8>}, {transform_indices = @transform_3, window_bounds = array<i64: 1, 8, 8>}]} {
    %c0_i32 = arith.constant 0 : i32
    %0 = arith.cmpi eq, %arg3, %c0_i32 : i32
    %1 = arith.extui %0 : i1 to i32
    %c0_i32_0 = arith.constant 0 : i32
    %2 = arith.cmpi ne, %1, %c0_i32_0 : i32
    scf.if %2 {
      %cst = arith.constant 0xFF800000 : f32
      %12 = vector.broadcast %cst : f32 to vector<8x1xf32>
      %c0 = arith.constant 0 : index
      %c0_5 = arith.constant 0 : index
      %13 = vector.load %arg8[%c0, %c0_5] : memref<8x1xf32, #tpu.memory_space<vmem>>, vector<8x1xf32>
      tpu.vector_store %arg8[%c0, %c0_5], %12 {strides = array<i32>} : memref<8x1xf32, #tpu.memory_space<vmem>>, vector<8x1xf32>,
      %cst_6 = arith.constant 0.000000e+00 : f32
      %14 = vector.broadcast %cst_6 : f32 to vector<8x1xf32>
      %c0_7 = arith.constant 0 : index
      %c0_8 = arith.constant 0 : index
      %15 = vector.load %arg9[%c0_7, %c0_8] : memref<8x1xf32, #tpu.memory_space<vmem>>, vector<8x1xf32>
      tpu.vector_store %arg9[%c0_7, %c0_8], %14 {strides = array<i32>} : memref<8x1xf32, #tpu.memory_space<vmem>>, vector<8x1xf32>,
      %cst_9 = arith.constant 0.000000e+00 : f32
      %16 = vector.broadcast %cst_9 : f32 to vector<8x8xf32>
      %c0_10 = arith.constant 0 : index
      %c0_11 = arith.constant 0 : index
      %17 = vector.load %arg10[%c0_10, %c0_11] : memref<8x8xf32, #tpu.memory_space<vmem>>, vector<8x8xf32>
      tpu.vector_store %arg10[%c0_10, %c0_11], %16 {strides = array<i32>} : memref<8x8xf32, #tpu.memory_space<vmem>>, vector<8x8xf32>,
    } else {
    }
    %3 = arith.cmpi slt, %arg3, %arg2 : i32
    %4 = arith.extui %3 : i1 to i32
    %c0_i32_1 = arith.constant 0 : i32
    %5 = arith.cmpi ne, %4, %c0_i32_1 : i32
    scf.if %5 {
      %c0 = arith.constant 0 : index
      %c0_5 = arith.constant 0 : index
      %c0_6 = arith.constant 0 : index
      %12 = vector.load %arg4[%c0, %c0_5, %c0_6] : memref<1x8x8xf32, #tpu.memory_space<vmem>>, vector<1x8x8xf32>
      %13 = vector.shape_cast %12 : vector<1x8x8xf32> to vector<8x8xf32>
      %cst = arith.constant 0.353553385 : f32
      %14 = vector.broadcast %cst : f32 to vector<8x8xf32>
      %15 = arith.mulf %13, %14 : vector<8x8xf32>
      %c0_7 = arith.constant 0 : index
      %c0_8 = arith.constant 0 : index
      %c0_9 = arith.constant 0 : index
      %16 = vector.load %arg5[%c0_7, %c0_8, %c0_9] : memref<1x8x8xf32, #tpu.memory_space<vmem>>, vector<1x8x8xf32>
      %17 = vector.shape_cast %16 : vector<1x8x8xf32> to vector<8x8xf32>
      %c0_10 = arith.constant 0 : index
      %c0_11 = arith.constant 0 : index
      %c0_12 = arith.constant 0 : index
      %18 = vector.load %arg6[%c0_10, %c0_11, %c0_12] : memref<1x8x8xf32, #tpu.memory_space<vmem>>, vector<1x8x8xf32>
      %19 = vector.shape_cast %18 : vector<1x8x8xf32> to vector<8x8xf32>
      %cst_13 = arith.constant dense<0.000000e+00> : vector<8x8xf32>
      %20 = tpu.matmul %15, %17, %cst_13 {dimension_numbers = #tpu.dot_dimension_numbers<[1], [1], [0], [0], [0, 0, 1, 0], [], []>} : vector<8x8xf32>, vector<8x8xf32>, vector<8x8xf32> -> vector<8x8xf32>
      %c0_14 = arith.constant 0 : index
      %c0_15 = arith.constant 0 : index
      %21 = vector.load %arg8[%c0_14, %c0_15] : memref<8x1xf32, #tpu.memory_space<vmem>>, vector<8x1xf32>
      %cst_16 = arith.constant dense<0xFF800000> : vector<8xf32>
      %22 = vector.multi_reduction <maximumf>, %20, %cst_16 [1] : vector<8x8xf32> to vector<8xf32>
      %23 = vector.shape_cast %22 : vector<8xf32> to vector<8x1xf32>
      %24 = arith.maximumf %21, %23 : vector<8x1xf32>
      %25 = arith.subf %21, %24 : vector<8x1xf32>
      %26 = math.exp %25 : vector<8x1xf32>
      %27 = vector.broadcast %24 : vector<8x1xf32> to vector<8x8xf32>
      %28 = arith.subf %20, %27 : vector<8x8xf32>
      %29 = math.exp %28 : vector<8x8xf32>
      %c0_17 = arith.constant 0 : index
      %c0_18 = arith.constant 0 : index
      %30 = vector.load %arg9[%c0_17, %c0_18] : memref<8x1xf32, #tpu.memory_space<vmem>>, vector<8x1xf32>
      %31 = arith.mulf %26, %30 : vector<8x1xf32>
      %cst_19 = arith.constant dense<0.000000e+00> : vector<8xf32>
      %32 = vector.multi_reduction <add>, %29, %cst_19 [1] : vector<8x8xf32> to vector<8xf32>
      %33 = vector.shape_cast %32 : vector<8xf32> to vector<8x1xf32>
      %34 = arith.addf %31, %33 : vector<8x1xf32>
      %c0_20 = arith.constant 0 : index
      %c0_21 = arith.constant 0 : index
      %35 = vector.load %arg9[%c0_20, %c0_21] : memref<8x1xf32, #tpu.memory_space<vmem>>, vector<8x1xf32>
      tpu.vector_store %arg9[%c0_20, %c0_21], %34 {strides = array<i32>} : memref<8x1xf32, #tpu.memory_space<vmem>>, vector<8x1xf32>,
      %c0_22 = arith.constant 0 : index
      %c0_23 = arith.constant 0 : index
      %36 = vector.load %arg10[%c0_22, %c0_23] : memref<8x8xf32, #tpu.memory_space<vmem>>, vector<8x8xf32>
      %37 = vector.broadcast %26 : vector<8x1xf32> to vector<8x8xf32>
      %38 = arith.mulf %37, %36 : vector<8x8xf32>
      %cst_24 = arith.constant dense<0.000000e+00> : vector<8x8xf32>
      %39 = tpu.matmul %29, %19, %cst_24 {dimension_numbers = #tpu.dot_dimension_numbers<[1], [0], [0], [1], [0, 0, 1, 1], [], []>} : vector<8x8xf32>, vector<8x8xf32>, vector<8x8xf32> -> vector<8x8xf32>
      %40 = arith.addf %38, %39 : vector<8x8xf32>
      %c0_25 = arith.constant 0 : index
      %c0_26 = arith.constant 0 : index
      %41 = vector.load %arg10[%c0_25, %c0_26] : memref<8x8xf32, #tpu.memory_space<vmem>>, vector<8x8xf32>
      tpu.vector_store %arg10[%c0_25, %c0_26], %40 {strides = array<i32>} : memref<8x8xf32, #tpu.memory_space<vmem>>, vector<8x8xf32>,
      %c0_27 = arith.constant 0 : index
      %c0_28 = arith.constant 0 : index
      %42 = vector.load %arg8[%c0_27, %c0_28] : memref<8x1xf32, #tpu.memory_space<vmem>>, vector<8x1xf32>
      tpu.vector_store %arg8[%c0_27, %c0_28], %24 {strides = array<i32>} : memref<8x1xf32, #tpu.memory_space<vmem>>, vector<8x1xf32>,
    } else {
    }
    %6 = arith.cmpi eq, %arg3, %arg2 : i32
    %7 = arith.extui %6 : i1 to i32
    %c0_i32_2 = arith.constant 0 : i32
    %8 = arith.cmpi ne, %7, %c0_i32_2 : i32
    scf.if %8 {
      %c0 = arith.constant 0 : index
      %c0_5 = arith.constant 0 : index
      %c0_6 = arith.constant 0 : index
      %12 = vector.load %arg4[%c0, %c0_5, %c0_6] : memref<1x8x8xf32, #tpu.memory_space<vmem>>, vector<1x8x8xf32>
      %13 = vector.shape_cast %12 : vector<1x8x8xf32> to vector<8x8xf32>
      %cst = arith.constant 0.353553385 : f32
      %14 = vector.broadcast %cst : f32 to vector<8x8xf32>
      %15 = arith.mulf %13, %14 : vector<8x8xf32>
      %c0_7 = arith.constant 0 : index
      %c0_8 = arith.constant 0 : index
      %c0_9 = arith.constant 0 : index
      %16 = vector.load %arg5[%c0_7, %c0_8, %c0_9] : memref<1x8x8xf32, #tpu.memory_space<vmem>>, vector<1x8x8xf32>
      %17 = vector.shape_cast %16 : vector<1x8x8xf32> to vector<8x8xf32>
      %c0_10 = arith.constant 0 : index
      %c0_11 = arith.constant 0 : index
      %c0_12 = arith.constant 0 : index
      %18 = vector.load %arg6[%c0_10, %c0_11, %c0_12] : memref<1x8x8xf32, #tpu.memory_space<vmem>>, vector<1x8x8xf32>
      %19 = vector.shape_cast %18 : vector<1x8x8xf32> to vector<8x8xf32>
      %cst_13 = arith.constant dense<0.000000e+00> : vector<8x8xf32>
      %20 = tpu.matmul %15, %17, %cst_13 {dimension_numbers = #tpu.dot_dimension_numbers<[1], [1], [0], [0], [0, 0, 1, 0], [], []>} : vector<8x8xf32>, vector<8x8xf32>, vector<8x8xf32> -> vector<8x8xf32>
      %c8_i32 = arith.constant 8 : i32
      %21 = arith.muli %arg2, %c8_i32 : i32
      %22 = tpu.iota {dimensions = array<i32: 0>} : vector<8x8xi32>
      %23 = vector.broadcast %21 : i32 to vector<8x8xi32>
      %24 = arith.addi %23, %22 : vector<8x8xi32>
      %c8_i32_14 = arith.constant 8 : i32
      %25 = arith.muli %arg3, %c8_i32_14 : i32
      %26 = tpu.iota {dimensions = array<i32: 1>} : vector<8x8xi32>
      %27 = vector.broadcast %25 : i32 to vector<8x8xi32>
      %28 = arith.addi %27, %26 : vector<8x8xi32>
      %29 = arith.cmpi sge, %24, %28 : vector<8x8xi32>
      %cst_15 = arith.constant -1.000000e+04 : f32
      %30 = vector.broadcast %cst_15 : f32 to vector<8x8xf32>
      %31 = arith.select %29, %20, %30 : vector<8x8xi1>, vector<8x8xf32>
      %c0_16 = arith.constant 0 : index
      %c0_17 = arith.constant 0 : index
      %32 = vector.load %arg8[%c0_16, %c0_17] : memref<8x1xf32, #tpu.memory_space<vmem>>, vector<8x1xf32>
      %cst_18 = arith.constant dense<0xFF800000> : vector<8xf32>
      %33 = vector.multi_reduction <maximumf>, %31, %cst_18 [1] : vector<8x8xf32> to vector<8xf32>
      %34 = vector.shape_cast %33 : vector<8xf32> to vector<8x1xf32>
      %35 = arith.maximumf %32, %34 : vector<8x1xf32>
      %36 = arith.subf %32, %35 : vector<8x1xf32>
      %37 = math.exp %36 : vector<8x1xf32>
      %38 = vector.broadcast %35 : vector<8x1xf32> to vector<8x8xf32>
      %39 = arith.subf %31, %38 : vector<8x8xf32>
      %40 = math.exp %39 : vector<8x8xf32>
      %c0_19 = arith.constant 0 : index
      %c0_20 = arith.constant 0 : index
      %41 = vector.load %arg9[%c0_19, %c0_20] : memref<8x1xf32, #tpu.memory_space<vmem>>, vector<8x1xf32>
      %42 = arith.mulf %37, %41 : vector<8x1xf32>
      %cst_21 = arith.constant dense<0.000000e+00> : vector<8xf32>
      %43 = vector.multi_reduction <add>, %40, %cst_21 [1] : vector<8x8xf32> to vector<8xf32>
      %44 = vector.shape_cast %43 : vector<8xf32> to vector<8x1xf32>
      %45 = arith.addf %42, %44 : vector<8x1xf32>
      %c0_22 = arith.constant 0 : index
      %c0_23 = arith.constant 0 : index
      %46 = vector.load %arg9[%c0_22, %c0_23] : memref<8x1xf32, #tpu.memory_space<vmem>>, vector<8x1xf32>
      tpu.vector_store %arg9[%c0_22, %c0_23], %45 {strides = array<i32>} : memref<8x1xf32, #tpu.memory_space<vmem>>, vector<8x1xf32>,
      %c0_24 = arith.constant 0 : index
      %c0_25 = arith.constant 0 : index
      %47 = vector.load %arg10[%c0_24, %c0_25] : memref<8x8xf32, #tpu.memory_space<vmem>>, vector<8x8xf32>
      %48 = vector.broadcast %37 : vector<8x1xf32> to vector<8x8xf32>
      %49 = arith.mulf %48, %47 : vector<8x8xf32>
      %cst_26 = arith.constant dense<0.000000e+00> : vector<8x8xf32>
      %50 = tpu.matmul %40, %19, %cst_26 {dimension_numbers = #tpu.dot_dimension_numbers<[1], [0], [0], [1], [0, 0, 1, 1], [], []>} : vector<8x8xf32>, vector<8x8xf32>, vector<8x8xf32> -> vector<8x8xf32>
      %51 = arith.addf %49, %50 : vector<8x8xf32>
      %c0_27 = arith.constant 0 : index
      %c0_28 = arith.constant 0 : index
      %52 = vector.load %arg10[%c0_27, %c0_28] : memref<8x8xf32, #tpu.memory_space<vmem>>, vector<8x8xf32>
      tpu.vector_store %arg10[%c0_27, %c0_28], %51 {strides = array<i32>} : memref<8x8xf32, #tpu.memory_space<vmem>>, vector<8x8xf32>,
      %c0_29 = arith.constant 0 : index
      %c0_30 = arith.constant 0 : index
      %53 = vector.load %arg8[%c0_29, %c0_30] : memref<8x1xf32, #tpu.memory_space<vmem>>, vector<8x1xf32>
      tpu.vector_store %arg8[%c0_29, %c0_30], %35 {strides = array<i32>} : memref<8x1xf32, #tpu.memory_space<vmem>>, vector<8x1xf32>,
    } else {
    }
    %c0_i32_3 = arith.constant 0 : i32
    %9 = arith.cmpi eq, %arg3, %c0_i32_3 : i32
    %10 = arith.extui %9 : i1 to i32
    %c0_i32_4 = arith.constant 0 : i32
    %11 = arith.cmpi ne, %10, %c0_i32_4 : i32
    scf.if %11 {
      %c0 = arith.constant 0 : index
      %c0_5 = arith.constant 0 : index
      %12 = vector.load %arg9[%c0, %c0_5] : memref<8x1xf32, #tpu.memory_space<vmem>>, vector<8x1xf32>
      %cst = arith.constant 1.000000e+00 : f32
      %13 = vector.broadcast %cst : f32 to vector<8x1xf32>
      %14 = arith.divf %13, %12 : vector<8x1xf32>
      %c0_6 = arith.constant 0 : index
      %c0_7 = arith.constant 0 : index
      %15 = vector.load %arg10[%c0_6, %c0_7] : memref<8x8xf32, #tpu.memory_space<vmem>>, vector<8x8xf32>
      %16 = vector.broadcast %14 : vector<8x1xf32> to vector<8x8xf32>
      %17 = arith.mulf %15, %16 : vector<8x8xf32>
      %c0_8 = arith.constant 0 : index
      %c0_9 = arith.constant 0 : index
      %c0_10 = arith.constant 0 : index
      %18 = vector.load %arg7[%c0_8, %c0_9, %c0_10] : memref<1x8x8xf32, #tpu.memory_space<vmem>>, vector<1x8x8xf32>
      %19 = vector.shape_cast %18 : vector<1x8x8xf32> to vector<8x8xf32>
      %20 = vector.shape_cast %17 : vector<8x8xf32> to vector<1x8x8xf32>
      tpu.vector_store %arg7[%c0_8, %c0_9, %c0_10], %20 {strides = array<i32>} : memref<1x8x8xf32, #tpu.memory_space<vmem>>, vector<1x8x8xf32>,
    } else {
    }
    return
  }
  func.func @transform_0(%arg0: i32, %arg1: i32, %arg2: i32, %arg3: i32) -> (i32, i32, i32) {
    %c4_i32 = arith.constant 4 : i32
    %0 = arith.muli %arg0, %c4_i32 : i32
    %1 = arith.addi %0, %arg1 : i32
    %c0_i32 = arith.constant 0 : i32
    %c0_i32_0 = arith.constant 0 : i32
    return %1, %arg2, %c0_i32 : i32, i32, i32
  }
  func.func @transform_1(%arg0: i32, %arg1: i32, %arg2: i32, %arg3: i32) -> (i32, i32, i32) {
    %c4_i32 = arith.constant 4 : i32
    %0 = arith.muli %arg0, %c4_i32 : i32
    %c8_i32 = arith.constant 8 : i32
    %1 = arith.addi %c8_i32, %0 : i32
    %2 = arith.addi %1, %arg1 : i32
    %3 = arith.minsi %arg3, %arg2 : i32
    %c0_i32 = arith.constant 0 : i32
    %c0_i32_0 = arith.constant 0 : i32
    return %2, %3, %c0_i32 : i32, i32, i32
  }
  func.func @transform_2(%arg0: i32, %arg1: i32, %arg2: i32, %arg3: i32) -> (i32, i32, i32) {
    %c4_i32 = arith.constant 4 : i32
    %0 = arith.muli %arg0, %c4_i32 : i32
    %c16_i32 = arith.constant 16 : i32
    %1 = arith.addi %c16_i32, %0 : i32
    %2 = arith.addi %1, %arg1 : i32
    %3 = arith.minsi %arg3, %arg2 : i32
    %c0_i32 = arith.constant 0 : i32
    %c0_i32_0 = arith.constant 0 : i32
    return %2, %3, %c0_i32 : i32, i32, i32
  }
  func.func @transform_3(%arg0: i32, %arg1: i32, %arg2: i32, %arg3: i32) -> (i32, i32, i32) {
    %c4_i32 = arith.constant 4 : i32
    %0 = arith.muli %arg0, %c4_i32 : i32
    %1 = arith.addi %0, %arg1 : i32
    %c0_i32 = arith.constant 0 : i32
    %c0_i32_0 = arith.constant 0 : i32
    return %1, %arg2, %c0_i32 : i32, i32, i32
  }
}

module attributes {stable_mosaic.version = 11 : i64} {
  func.func @_linear_kernel(%arg0: i32, %arg1: i32, %arg2: i32, %arg3: memref<16x32xf32, #tpu.memory_space<vmem>>, %arg4: memref<32x32xf32, #tpu.memory_space<vmem>>, %arg5: memref<1x32xf32, #tpu.memory_space<vmem>>, %arg6: memref<16x32xf32, #tpu.memory_space<vmem>>, %arg7: memref<16x32xf32, #tpu.memory_space<vmem>>) attributes {dimension_semantics = [#tpu.dimension_semantics<parallel>, #tpu.dimension_semantics<parallel>, #tpu.dimension_semantics<arbitrary>], iteration_bounds = array<i64: 1, 1, 1>, scalar_prefetch = 0 : i64, scratch_operands = 1 : i64, tpu.core_type = #tpu.core_type<tc>, window_params = [{transform_indices = @transform_0, window_bounds = array<i64: 16, 32>}, {transform_indices = @transform_1, window_bounds = array<i64: 32, 32>}, {transform_indices = @transform_2, window_bounds = array<i64: 1, 32>}, {transform_indices = @transform_3, window_bounds = array<i64: 16, 32>}]} {
    %c0_i32 = arith.constant 0 : i32
    %0 = arith.cmpi eq, %arg2, %c0_i32 : i32
    %1 = arith.extui %0 : i1 to i32
    %c0_i32_0 = arith.constant 0 : i32
    %2 = arith.cmpi ne, %1, %c0_i32_0 : i32
    scf.if %2 {
      %cst_10 = arith.constant 0.000000e+00 : f32
      %12 = vector.broadcast %cst_10 : f32 to vector<16x32xf32>
      %c0_11 = arith.constant 0 : index
      %c0_12 = arith.constant 0 : index
      %13 = vector.load %arg7[%c0_11, %c0_12] : memref<16x32xf32, #tpu.memory_space<vmem>>, vector<16x32xf32>
      tpu.vector_store %arg7[%c0_11, %c0_12], %12 {strides = array<i32>} : memref<16x32xf32, #tpu.memory_space<vmem>>, vector<16x32xf32>,
    } else {
    }
    %c0 = arith.constant 0 : index
    %c0_1 = arith.constant 0 : index
    %3 = vector.load %arg7[%c0, %c0_1] : memref<16x32xf32, #tpu.memory_space<vmem>>, vector<16x32xf32>
    %c0_2 = arith.constant 0 : index
    %c0_3 = arith.constant 0 : index
    %4 = vector.load %arg3[%c0_2, %c0_3] : memref<16x32xf32, #tpu.memory_space<vmem>>, vector<16x32xf32>
    %c0_4 = arith.constant 0 : index
    %c0_5 = arith.constant 0 : index
    %5 = vector.load %arg4[%c0_4, %c0_5] : memref<32x32xf32, #tpu.memory_space<vmem>>, vector<32x32xf32>
    %cst = arith.constant dense<0.000000e+00> : vector<16x32xf32>
    %6 = tpu.matmul %4, %5, %cst {dimension_numbers = #tpu.dot_dimension_numbers<[1], [0], [0], [1], [0, 0, 1, 1], [], []>} : vector<16x32xf32>, vector<32x32xf32>, vector<16x32xf32> -> vector<16x32xf32>
    %7 = arith.addf %3, %6 : vector<16x32xf32>
    %c0_6 = arith.constant 0 : index
    %c0_7 = arith.constant 0 : index
    %8 = vector.load %arg7[%c0_6, %c0_7] : memref<16x32xf32, #tpu.memory_space<vmem>>, vector<16x32xf32>
    tpu.vector_store %arg7[%c0_6, %c0_7], %7 {strides = array<i32>} : memref<16x32xf32, #tpu.memory_space<vmem>>, vector<16x32xf32>,
    %c0_i32_8 = arith.constant 0 : i32
    %9 = arith.cmpi eq, %arg2, %c0_i32_8 : i32
    %10 = arith.extui %9 : i1 to i32
    %c0_i32_9 = arith.constant 0 : i32
    %11 = arith.cmpi ne, %10, %c0_i32_9 : i32
    scf.if %11 {
      %c0_10 = arith.constant 0 : index
      %c0_11 = arith.constant 0 : index
      %12 = vector.load %arg7[%c0_10, %c0_11] : memref<16x32xf32, #tpu.memory_space<vmem>>, vector<16x32xf32>
      %c0_12 = arith.constant 0 : index
      %c0_13 = arith.constant 0 : index
      %13 = vector.load %arg5[%c0_12, %c0_13] : memref<1x32xf32, #tpu.memory_space<vmem>>, vector<1x32xf32>
      %14 = vector.broadcast %13 : vector<1x32xf32> to vector<16x32xf32>
      %15 = arith.addf %12, %14 : vector<16x32xf32>
      %c0_14 = arith.constant 0 : index
      %c0_15 = arith.constant 0 : index
      %16 = vector.load %arg6[%c0_14, %c0_15] : memref<16x32xf32, #tpu.memory_space<vmem>>, vector<16x32xf32>
      tpu.vector_store %arg6[%c0_14, %c0_15], %15 {strides = array<i32>} : memref<16x32xf32, #tpu.memory_space<vmem>>, vector<16x32xf32>,
    } else {
    }
    return
  }
  func.func @transform_0(%arg0: i32, %arg1: i32, %arg2: i32) -> (i32, i32) {
    %c0_i32 = arith.constant 0 : i32
    return %arg0, %arg2 : i32, i32
  }
  func.func @transform_1(%arg0: i32, %arg1: i32, %arg2: i32) -> (i32, i32) {
    %c0_i32 = arith.constant 0 : i32
    return %arg2, %arg1 : i32, i32
  }
  func.func @transform_2(%arg0: i32, %arg1: i32, %arg2: i32) -> (i32, i32) {
    %c0_i32 = arith.constant 0 : i32
    %c0_i32_0 = arith.constant 0 : i32
    return %c0_i32, %arg1 : i32, i32
  }
  func.func @transform_3(%arg0: i32, %arg1: i32, %arg2: i32) -> (i32, i32) {
    %c0_i32 = arith.constant 0 : i32
    return %arg0, %arg1 : i32, i32
  }
}

</mosaic_0001>

<bundles_post_ra>
// kernel: unidirectional_attention.3
= control target key start
LH: loop header
LB: loop body
LE: loop exit
PB: predicated region body
PF: predicated region fallthrough
CT: control target
= control target key end

     0   :  { %8 = vsyncpa [#allocation4], 0  ;;  %s311_s0 = inlined_call_operand.hbm [shape: f32[16,32], index: 0, kind: input, shape index: {}]   ;;  %s312_s1 = inlined_call_operand.hbm [shape: f32[32,96], index: 1, kind: input, shape index: {}]   ;;  %s313_s2 = inlined_call_operand.vmem [shape: f32[1,96], index: 2, kind: input, shape index: {}]   ;;  %s314_s3 = inlined_call_operand.vmem [shape: f32[16,96], index: 3, kind: output, shape index: {}]  }
   0x1   :  { %9 = vsyncpa [#allocation6], 0  ;;  %s247_s12 = smov [#allocation3]   ;;  %s199_s16 = scalar_lea.hbm %s311_s0, 256 }
   0x2   :  { %s15_s13 = sshll.u32 %s247_s12, 4  ;;  %p200_p0 = scmp.ne.s32.totalorder %s311_s0, %s199_s16  ;;  %s16_s13 = int_to_ptr.vmem [resolvable:$true] %s15_s13 }
   0x3   :  { %p203_p1 = scmp.lt.u32.totalorder %s199_s16, %s311_s0 }
   0x5   :  { %p205_p2 = pnand %p203_p1, %p200_p0 }
   0x7   :  { %208 = shalt.err (!%p205_p2)
}
   0x8   :  { %s209_s21 = scalar_lea.vmem %s16_s13, 256  ;;  %p214_p4 = scmp.lt.s32.totalorder %s16_s13, %s16_s13 }
   0x9   :  { %p210_p3 = scmp.ne.s32.totalorder %s16_s13, %s209_s21  ;;  %p215_p5 = scmp.lt.s32.totalorder %s209_s21, %s209_s21 }
   0xb   :  { %p216_p6 = por %p215_p5, %p214_p4 }
   0xd   :  { %p217_p7 = pnand %p216_p6, %p210_p3 }
   0xf   :  { %220 = shalt.err (!%p217_p7)
}
  0x10   :  { %s248_s22 = smov 128   ;;  %s249_s23 = smov 8  }
  0x11   :  { %21 = dma.hbm_to_vmem [thread:$0]  %s311_s0, 256, %s16_s13, [#allocation4], %s248_s22, %s248_s22, %s249_s23  }
  0x12   :  { %s250_s26 = smov [#allocation5]   ;;  %s221_s30 = scalar_lea.hbm %s312_s1, 512 }
  0x13   :  { %s27_s27 = sshll.u32 %s250_s26, 4  ;;  %p222_p8 = scmp.ne.s32.totalorder %s312_s1, %s221_s30  ;;  %s28_s27 = int_to_ptr.vmem [resolvable:$true] %s27_s27 }
  0x14   :  { %p225_p9 = scmp.lt.u32.totalorder %s221_s30, %s312_s1 }
  0x16   :  { %p227_p10 = pnand %p225_p9, %p222_p8 }
  0x18   :  { %230 = shalt.err (!%p227_p10)
}
  0x19   :  { %s231_s8 = scalar_lea.vmem %s28_s27, 512  ;;  %p236_p12 = scmp.lt.s32.totalorder %s28_s27, %s28_s27 }
  0x1a   :  { %p232_p11 = scmp.ne.s32.totalorder %s28_s27, %s231_s8  ;;  %p237_p13 = scmp.lt.s32.totalorder %s231_s8, %s231_s8 }
  0x1c   :  { %p238_p0 = por %p237_p13, %p236_p12 }
  0x1e   :  { %p239_p1 = pnand %p238_p0, %p232_p11 }
  0x20   :  { %242 = shalt.err (!%p239_p1)
}
  0x21   :  { %33 = dma.hbm_to_vmem [thread:$0]  %s312_s1, 512, %s28_s27, [#allocation6], %s248_s22, %s248_s22, %s249_s23  }
  0x22   :  { %243 = dma.done.wait [#allocation4], 256  }
  0x23   :  { %244 = vsyncadd [#allocation4], 4294967040 }
  0x24   :  { %245 = dma.done.wait [#allocation6], 512  }
  0x25   :  { %246 = vsyncadd [#allocation6], 4294966784  ;;  %vm46_vm0 = vcmask 785408   ;;  %v251_v0 = vmov 0.0   ;;  %vm57_vm1 = vcmask 261120   ;;  %v53_v1 = vld [vmem:[#allocation5] sm:$0xff] }
  0x26   :  { %48 = vst.msk [vmem:[#allocation2 + $0x8] sm:$0xff] %vm46_vm0, %v251_v0  ;;  %47 = vst.msk [vmem:[#allocation2] sm:$0xff] %vm46_vm0, %v251_v0  ;;  %v54_v2 = vld [vmem:[#allocation5 + $0x8] sm:$0xff]  ;;  %v55_v3 = vld [vmem:[#allocation5 + $0x10] sm:$0xff] }
  0x27   :  { %v186_v4 = vpack.c.bf16 %v54_v2, %v53_v1  ;;  %v56_v5 = vld [vmem:[#allocation5 + $0x18] sm:$0xff]  ;;  %v51_v6 = vld [vmem:[#allocation3] sm:$0xff]  ;;  %v168_v15 = vld [vmem:[%s313_s2] ss:$0 sm:$0xff] }
  0x28   :  { %v190_v7 = vpack.c.bf16 %v56_v5, %v55_v3  ;;  %183 = vmatprep.mubr.msk.f32.mxu0 %vm57_vm1, %v51_v6  ;;  %v52_v8 = vld [vmem:[#allocation3 + $0x8] sm:$0xff] }
  0x29   :  { %187 = vmatprep.subr.bf16.mxu0 %v186_v4 }
  0x2a   :  { %189 = vmatpush3.bf16.msra.mxu0 %v186_v4 }
  0x2b   :  { %191 = vmatprep.subr.bf16.mxu0 %v190_v7 }
  0x2d   :  { %v50_v9 = vld [vmem:[#allocation2 + $0x8] sm:$0xff]  ;;  %v49_v10 = vld [vmem:[#allocation2] sm:$0xff] }
  0x2e   :  { %193 = vmatpush3.bf16.msra.mxu0 %v190_v7 }
  0x31   :  { %184 = vmatmul.mubr.msk.f32.vlgmr.msra.gmra.mrb[0].mxu0 %vm57_vm1, %v52_v8 }
 0x104   :  { %v185_v11 = vpop.f32.mrb[0].mxu0 }
 0x105   :  { %v140_v12 = vadd.f32 %v185_v11, %v50_v9  ;;  %v130_v13 = vpop.f32.mrb[1].mxu0 }
 0x106   :  { %v139_v14 = vadd.f32 %v130_v13, %v49_v10 }
 0x107   :  { %143 = vst.msk [vmem:[#allocation2 + $0x8] sm:$0xff] %vm46_vm0, %v140_v12 }
 0x108   :  { %142 = vst.msk [vmem:[#allocation2] sm:$0xff] %vm46_vm0, %v139_v14 }
 0x10e   :  { %v148_v16 = vld [vmem:[#allocation2 + $0x8] sm:$0xff] }
 0x10f   :  { %v157_v17 = vadd.f32 %v168_v15, %v148_v16  ;;  %v147_v18 = vld [vmem:[#allocation2] sm:$0xff] }
 0x110   :  { %v156_v19 = vadd.f32 %v168_v15, %v147_v18 }
 0x111   :  { %159 = vst.msk [vmem:[%s314_s3 + $0x8] sm:$0xff] %vm46_vm0, %v157_v17 }
 0x112   :  { %158 = vst.msk [vmem:[%s314_s3] sm:$0xff] %vm46_vm0, %v156_v19 }
 0x113   :  { %164 = vsyncpa [#allocation4], 1 }
 0x114   :  { %165 = vsyncpa [#allocation6], 1 }

// kernel: unidirectional_attention.4
= control target key start
LH: loop header
LB: loop body
LE: loop exit
PB: predicated region body
PF: predicated region fallthrough
CT: control target
= control target key end

     0   :  { %s1060_s12 = smov 0   ;;  %s1062_s13 = smov 0   ;;  %s1145_s0 = inlined_call_operand.vmem [shape: f32[24,8,8], index: 0, kind: input, shape index: {}, may-alias: {0,1,2}]   ;;  %s1146_s1 = inlined_call_operand.vmem [shape: f32[24,8,8], index: 1, kind: input, shape index: {}, may-alias: {0,1,2}]   ;;  %s1147_s2 = inlined_call_operand.vmem [shape: f32[24,8,8], index: 2, kind: input, shape index: {}, may-alias: {0,1,2}]   ;;  %s1148_s3 = inlined_call_operand.vmem [shape: f32[8,8,8], index: 3, kind: output, shape index: {}]  }
   0x1   :  { %s1064_s14 = smov 0   ;;  %s1066_s15 = smov 0  }
   0x2   :  { %s1068_s16 = smov 0  }
   0x3 LB: > { %s35_s17 = sadd.s32 1, %s1026_s14  ;;  %s39_s18 = sadd.s32 1, %s1030_s15  ;;  %s1034_s16 = sphi %s1068_s16, %s13_s16   ;;  %s1030_s15 = sphi %s1066_s15, %s1152_s15   ;;  %s1026_s14 = sphi %s1064_s14, %s1151_s14   ;;  %s1022_s13 = sphi %s1062_s13, %s1150_s13   ;;  %s1018_s12 = sphi %s1060_s12, %s1149_s12  }
   0x4   : > { %p37_p0 = scmp.ge.s32.totalorder %s35_s17, 4  ;;  %p913_p1 = scmp.ge.s32.totalorder %s1034_s16, 1 }
   0x5   : > { %p249_p2 = scmp.lt.s32.totalorder %s1034_s16, 9 }
   0x6   : > { %s1154_s17 = smov (%p37_p0, %s35_s17), 0  ;;  %s1156_s18 = smov (!%p37_p0, %s39_s18), %s1030_s15 }
   0x7   : > { %p250_p3 = pnand %p913_p1, %p249_p2  ;;  %p41_p4 = scmp.ge.s32.totalorder %s1156_s18, 2 }
   0x8   : > { %s1092_s19 = sshll.u32 (!%p250_p3), %s1022_s13, 2  ;;  %vm368_vm0 = vcmask (!%p250_p3), 64512   ;;  %v1036_v0 = vmov (!%p250_p3), 0.0   ;;  %vm1037_vm1 = vmmov (!%p250_p3), 0   ;;  %vm365_vm2 = vcmask (!%p250_p3), 7168  }
   0x9   : > { %s1158_s18 = smov (%p41_p4, %s1156_s18), 0  ;;  %253 = sbr.rel (%p250_p3) target bundleno = 821 (0x335), region = 32 }
   0xa   : > { %934 = vmatprep.subr.mxu0 (!%p250_p3), %v1036_v0  ;;  %s1096_s20 = sadd.s32 (!%p250_p3), %s1018_s12, %s1092_s19  ;;  %s317_s21 = sadd.s32 (!%p250_p3), 8, %s1092_s19  ;;  %369 = vst.msk [vmem:[#allocation4] sm:$0xff] (!%p250_p3), %vm368_vm0, %v1036_v0  ;;  %936 = vmatprep.mubr.msk.f32.mxu0 (!%p250_p3), %vm1037_vm1, %v1036_v0  ;;  %v1038_v4 = vmov (!%p250_p3), -inf   ;;  %v648_v5 = vlaneseq (!%p250_p3)  ;;  %v1039_v12 = vmov (!%p250_p3), 0  }
   0xb   : > { %s318_s22 = sadd.s32 (!%p250_p3), %s1018_s12, %s317_s21  ;;  %p307_p5 = scmp.lt.s32.totalorder (!%p250_p3), %s1096_s20, 23  ;;  %939 = vmatprep.subr.mxu1 (!%p250_p3), %v1036_v0  ;;  %941 = vmatprep.mubr.msk.f32.mxu1 (!%p250_p3), %vm1037_vm1, %v1036_v0  ;;  %366 = vst.msk [vmem:[#allocation2] sm:$0xff] (!%p250_p3), %vm365_vm2, %v1038_v4  ;;  %367 = vst.msk [vmem:[#allocation3] sm:$0xff] (!%p250_p3), %vm365_vm2, %v1036_v0 }
   0xc   : > { %p321_p6 = scmp.lt.s32.totalorder (!%p250_p3), %s318_s22, 23  ;;  %v649_v6 = vshrl.u32 (!%p250_p3), %v648_v5, 7  ;;  %v654_v7 = vand.u32 (!%p250_p3), 127, %v648_v5  ;;  %988 = vset.pattern.permute.xlu0 (!%p250_p3), %v1039_v12  ;;  %989 = vset.pattern.permute.xlu1 (!%p250_p3), %v1039_v12  ;;  %s334_s5 = sadd.s32 (!%p250_p3), 16, %s1092_s19 }
   0xd   : > { %s335_s6 = sadd.s32 (!%p250_p3), %s1018_s12, %s334_s5  ;;  %p352_p8 = scmp.lt.s32.totalorder (!%p250_p3), %s1096_s20, 7 }
   0xe   : > { %vm657_vm3 = vcmp.ge.s32.totalorder (!%p250_p3), %v649_v6, %v654_v7  ;;  %p338_p7 = scmp.lt.s32.totalorder (!%p250_p3), %s335_s6, 23 }
  0x10   : > { %s308_s23 = scalar_select %p307_p5, %s1096_s20, 23 }
  0x11   : > { %s1160_s22 = smov (!%p321_p6, %s318_s22), 23  ;;  %s1162_s6 = smov (!%p338_p7, %s335_s6), 23  ;;  %v683_v31 = vld [vmem:[#allocation4] sm:$0xff] }
  0x12   : > { %s915_s24 = sshll.u32 %s308_s23, 3  ;;  %s917_s25 = sshll.u32 %s1160_s22, 3  ;;  %v659_v13 = vld [vmem:[#allocation2] sm:$0xff]  ;;  %v675_v25 = vld [vmem:[#allocation3] sm:$0xff] }
  0x13   : > { %s313_s28 = scalar_lea.vmem %s1145_s0, %s915_s24  ;;  %s327_s4 = scalar_lea.vmem %s1146_s1, %s917_s25 }
  0x14   : > { %v566_v1 = vld [vmem:[%s313_s28] sm:$0xff]  ;;  %s919_s7 = sshll.u32 %s1162_s6, 3  ;;  %s1164_s20 = smov (!%p352_p8, %s1096_s20), 7 }
  0x15   : > { %v568_v2 = vld [vmem:[%s327_s4] sm:$0xff]  ;;  %v567_v3 = vmul.f32 0.35355338, %v566_v1  ;;  %s344_s10 = scalar_lea.vmem %s1147_s2, %s919_s7  ;;  %s921_s11 = sshll.u32 %s1164_s20, 3 }
  0x16   : > { %935 = vmatpush3.xpose.msk.msra.mxu0 %vm368_vm0, %v568_v2  ;;  %v569_v17 = vld [vmem:[%s344_s10] sm:$0xff]  ;;  %s358_s19 = scalar_lea.vmem %s1148_s3, %s921_s11 }
  0x17   : > { %940 = vmatpush3.msra.mxu1 %v569_v17 }
  0x19   : > { %937 = vmatmul.mubr.msk.f32.vlgmr.msra.gmra.mrb[0].mxu0 %vm368_vm0, %v567_v3 }
  0xec   : > { %v643_v8 = vpop.f32.mrb[0].mxu0 }
  0xed   : > { %v658_v9 = vsel %vm657_vm3, %v643_v8, -10000.0  ;;  %v938_v10 = vpop.f32.mrb[1].mxu0 }
  0xee   : > { %v660_v11 = vsel %vm368_vm0, %v658_v9, -inf }
  0xef   : > { %661 = vmax.xlane.f32.xlu0 %v660_v11 }
 0x17c   : > { %v662_v14 = vpop.xlane.xlu0 %661 }
 0x17d   : > { %v663_v15 = vmax.f32 %v659_v13, %v662_v14 }
 0x17f   : > { %v664_v16 = vsub.f32 %v659_v13, %v663_v15  ;;  %765 = vst.msk [vmem:[#allocation2] sm:$0xff] %vm365_vm2, %v663_v15  ;;  %669 = vperm.xlu0 %988, %v663_v15  }
 0x181   : > { %v665_v23 = vmul.f32 1.442695, %v664_v16 }
 0x1fe   : > { %v670_v18 = vpop.permute.xlu0 %669 }
 0x1ff   : > { %v672_v19 = vsub.f32 %v658_v9, %v670_v18 }
 0x201   : > { %v673_v20 = vmul.f32 1.442695, %v672_v19 }
 0x203   : > { %990 = vpow2.f32 %v673_v20 }
 0x204   : > { %992 = vpow2.f32 %v665_v23 }
 0x20d   : > { %v991_v21 = vpop.eup %990 }
 0x20e   : > { %942 = vmatmul.mubr.msk.f32.vlgmr.msra.gmra.mrb[0].mxu1 %vm368_vm0, %v991_v21  ;;  %v677_v22 = vsel %vm368_vm0, %v991_v21, 0.0  ;;  %v993_v24 = vpop.eup %992 }
 0x20f   : > { %678 = vadd.xlane.f32.xlu1 %v677_v22  ;;  %v676_v26 = vmul.f32 %v993_v24, %v675_v25 }
 0x220   : > { %686 = vperm.xlu1 %989, %v993_v24  }
 0x29c   : > { %v679_v27 = vpop.xlane.xlu1 %678 }
 0x29d   : > { %v680_v28 = vadd.f32 %v679_v27, %v676_v26 }
 0x29f   : > { %682 = vst.msk [vmem:[#allocation3] sm:$0xff] %vm365_vm2, %v680_v28 }
 0x2a0   : > { %v687_v32 = vpop.permute.xlu1 %686 }
 0x2a1   : > { %v689_v33 = vmul.f32 %v687_v32, %v683_v31 }
 0x2a6   : > { %v769_v29 = vld [vmem:[#allocation3] sm:$0xff] }
 0x2a7   : > { %994 = vrcp.f32 %v769_v29 }
 0x2b1   : > { %v995_v30 = vpop.eup %994 }
 0x2b2   : > { %775 = vperm.xlu1 %989, %v995_v30  }
 0x2e1   : > { %v759_v34 = vpop.f32.mrb[0].mxu1 }
 0x2e2   : > { %v763_v35 = vadd.f32 %v759_v34, %v689_v33  ;;  %v943_v36 = vpop.f32.mrb[1].mxu1 }
 0x2e4   : > { %764 = vst.msk [vmem:[#allocation4] sm:$0xff] %vm368_vm0, %v763_v35 }
 0x2eb   : > { %v772_v37 = vld [vmem:[#allocation4] sm:$0xff] }
 0x331   : > { %v776_v38 = vpop.permute.xlu1 %775 }
 0x332   : > { %v778_v39 = vmul.f32 %v776_v38, %v772_v37 }
 0x334   : > { %780 = vst.msk [vmem:[%s358_s19] sm:$0xff] %vm368_vm0, %v778_v39 }
 0x335 PF: > { %s13_s16 = sadd.s32 1, %s1034_s16   ;;  %s1149_s12 = smov %s1026_s14 }
 0x336   : > { %p10_p9 = scmp.ge.s32.totalorder %s13_s16, 10   ;;  %s1150_s13 = smov %s1030_s15 }
 0x337   : > { %s1151_s14 = smov %s1154_s17  ;;  %s1152_s15 = smov %s1158_s18 }
 0x338   :  { %12 = sbr.rel (!%p10_p9) target bundleno = 3 (0x3), region = 84 }

// kernel: unidirectional_attention.5
= control target key start
LH: loop header
LB: loop body
LE: loop exit
PB: predicated region body
PF: predicated region fallthrough
CT: control target
= control target key end

     0   :  { %vm19_vm0 = vcmask 261120   ;;  %v204_v6 = vmov 0.0   ;;  %s269_s0 = inlined_call_operand.vmem [shape: f32[16,32], index: 0, kind: input, shape index: {}]   ;;  %s270_s1 = inlined_call_operand.vmem [shape: f32[32,32], index: 1, kind: input, shape index: {}]   ;;  %s271_s2 = inlined_call_operand.vmem [shape: f32[1,32], index: 2, kind: input, shape index: {}]   ;;  %s272_s3 = inlined_call_operand.hbm [shape: f32[16,32], index: 3, kind: output, shape index: {}]  }
   0x1   :  { %v26_v0 = vld [vmem:[%s270_s1] sm:$0xff]  ;;  %v27_v1 = vld [vmem:[%s270_s1 + $0x8] sm:$0xff]  ;;  %v28_v2 = vld [vmem:[%s270_s1 + $0x10] sm:$0xff]  ;;  %21 = vst.msk [vmem:[#allocation2 + $0x8] sm:$0xff] %vm19_vm0, %v204_v6 }
   0x2   :  { %v168_v3 = vpack.c.bf16 %v27_v1, %v26_v0  ;;  %v29_v4 = vld [vmem:[%s270_s1 + $0x18] sm:$0xff]  ;;  %v24_v5 = vld [vmem:[%s269_s0] sm:$0xff]  ;;  %20 = vst.msk [vmem:[#allocation2] sm:$0xff] %vm19_vm0, %v204_v6 }
   0x3   :  { %v172_v7 = vpack.c.bf16 %v29_v4, %v28_v2  ;;  %165 = vmatprep.mubr.msk.f32.mxu0 %vm19_vm0, %v24_v5 }
   0x4   :  { %8 = vsyncpa [#allocation4], 0  ;;  %169 = vmatprep.subr.bf16.mxu0 %v168_v3  ;;  %v25_v8 = vld [vmem:[%s269_s0 + $0x8] sm:$0xff]  ;;  %v150_v15 = vld [vmem:[%s271_s2] ss:$0 sm:$0xff]  ;;  %s205_s25 = smov [#allocation3]  }
   0x5   :  { %171 = vmatpush3.bf16.msra.mxu0 %v168_v3  ;;  %s137_s26 = sshll.u32 %s205_s25, 4  ;;  %s138_s26 = int_to_ptr.vmem [resolvable:$true] %s137_s26 }
   0x6   :  { %173 = vmatprep.subr.bf16.mxu0 %v172_v7  ;;  %s180_s0 = scalar_lea.vmem %s138_s26, 256  ;;  %p185_p1 = scmp.lt.s32.totalorder %s138_s26, %s138_s26 }
   0x7   :  { %p181_p0 = scmp.ne.s32.totalorder %s138_s26, %s180_s0  ;;  %p186_p2 = scmp.lt.s32.totalorder %s180_s0, %s180_s0 }
   0x8   :  { %v23_v9 = vld [vmem:[#allocation2 + $0x8] sm:$0xff] }
   0x9   :  { %175 = vmatpush3.bf16.msra.mxu0 %v172_v7  ;;  %v22_v10 = vld [vmem:[#allocation2] sm:$0xff]  ;;  %p187_p3 = por %p186_p2, %p185_p1 }
   0xb   :  { %p188_p4 = pnand %p187_p3, %p181_p0 }
   0xc   :  { %166 = vmatmul.mubr.msk.f32.vlgmr.msra.gmra.mrb[0].mxu0 %vm19_vm0, %v25_v8 }
  0xdf   :  { %v167_v11 = vpop.f32.mrb[0].mxu0 }
  0xe0   :  { %v113_v12 = vadd.f32 %v167_v11, %v23_v9  ;;  %v103_v13 = vpop.f32.mrb[1].mxu0 }
  0xe1   :  { %v112_v14 = vadd.f32 %v103_v13, %v22_v10 }
  0xe2   :  { %115 = vst.msk [vmem:[#allocation2 + $0x8] sm:$0xff] %vm19_vm0, %v113_v12 }
  0xe3   :  { %114 = vst.msk [vmem:[#allocation2] sm:$0xff] %vm19_vm0, %v112_v14 }
  0xe9   :  { %v120_v16 = vld [vmem:[#allocation2 + $0x8] sm:$0xff] }
  0xea   :  { %v119_v17 = vld [vmem:[#allocation2] sm:$0xff]  ;;  %v129_v18 = vadd.f32 %v150_v15, %v120_v16 }
  0xeb   :  { %v128_v19 = vadd.f32 %v150_v15, %v119_v17 }
  0xec   :  { %131 = vst.msk [vmem:[#allocation3 + $0x8] sm:$0xff] %vm19_vm0, %v129_v18 }
  0xed   :  { %130 = vst.msk [vmem:[#allocation3] sm:$0xff] %vm19_vm0, %v128_v19 }
  0xee   :  { %191 = shalt.err (!%p188_p4)
}
  0xef   :  { %s192_s28 = scalar_lea.hbm %s272_s3, 256 }
  0xf0   :  { %p193_p5 = scmp.ne.s32.totalorder %s272_s3, %s192_s28  ;;  %p196_p6 = scmp.lt.u32.totalorder %s192_s28, %s272_s3 }
  0xf2   :  { %p198_p7 = pnand %p196_p6, %p193_p5 }
  0xf4   :  { %201 = shalt.err (!%p198_p7)
}
  0xf5   :  { %s206_s6 = smov 128   ;;  %s207_s7 = smov 8  }
  0xf6   :  { %143 = dma.vmem_to_hbm [thread:$0]  %s138_s26, 256, %s272_s3, [#allocation4], %s206_s6, %s206_s6, %s207_s7  }
  0xf7   :  { %202 = dma.done.wait [#allocation4], 256  }
  0xf8   :  { %203 = vsyncadd [#allocation4], 4294967040 }
  0xf9   :  { %147 = vsyncpa [#allocation4], 1 }

</bundles_post_ra>
